<compile_context>
chip_gen: v5e
topology: v5e:2x2
jax: 0.10.0
libtpu: 0.0.40
codegen_flags: <defaults>
</compile_context>

<pallas_src>
import functools
import math

import jax
import jax.numpy as jnp
from jax import lax
from jax.experimental import pallas as pl
from jax.experimental.pallas import tpu as pltpu


_N_INFLIGHT = 8  # row-gather DMAs in flight for the HBM-streaming path


# ---------------------------------------------------------------------------
# Kernels
# ---------------------------------------------------------------------------
def _embed_onehot_kernel(ids_ref, emb_ref, out_ref, *, scale):
    """Small-vocab path: one-hot matmul gather on the MXU.

    ids_ref: (TB, 1) int32 VMEM block of token ids.
    emb_ref: (V, D) VMEM-resident embedding table.
    out_ref: (TB, D) output block.
    """
    tb = out_ref.shape[0]
    v = emb_ref.shape[0]
    idx = jnp.clip(ids_ref[...], 0, v - 1)                    # (TB, 1), OOB-safe
    iota = lax.broadcasted_iota(jnp.int32, (tb, v), 1)        # (TB, V) lane iota
    onehot = (iota == idx).astype(emb_ref.dtype)              # 0/1 exact in bf16
    acc = jnp.dot(onehot, emb_ref[...], preferred_element_type=jnp.float32)
    out_ref[...] = (acc * scale).astype(out_ref.dtype)


def _embed_rowgather_kernel(ids_smem, emb_ref, out_ref, *, scale, tb):
    """VMEM-resident table path: unrolled per-row dynamic gather + one dense scale.

    ids_smem: (n_tok_padded,) int32 scalar-prefetched ids in SMEM.
    emb_ref:  (V, D) VMEM-resident embedding table.
    out_ref:  (TB, D) output block (same dtype as the table).
    """
    v = emb_ref.shape[0]
    base = pl.program_id(0) * tb

    def body(t, carry):
        tok = jnp.clip(ids_smem[base + t], 0, v - 1)          # OOB-safe row index
        out_ref[pl.ds(t, 1), :] = emb_ref[pl.ds(tok, 1), :]   # raw row copy
        return carry

    # Unrolled so the LLO scheduler can overlap the dynamic vld/vst chains.
    lax.fori_loop(0, tb, body, 0, unroll=8)

    # Single dense scale(+cast) pass per block instead of 1/8-dense per-row work.
    out_ref[...] = (out_ref[...].astype(jnp.float32) * scale).astype(out_ref.dtype)


def _embed_dma_gather_kernel(ids_smem, emb_hbm, out_ref, stage_ref, sems,
                             *, scale, tb, vocab):
    """HBM-streaming path: per-row DMA gather with a sliding window of DMAs.

    ids_smem:  (n_tok_padded,) int32 scalar-prefetched ids in SMEM.
    emb_hbm:   (V, D) embedding table left in HBM (memory_space=pl.ANY).
    out_ref:   (TB, D) output block.
    stage_ref: (TB, D) VMEM staging buffer (table dtype).
    sems:      (N_INFLIGHT,) DMA semaphores.
    """
    base = pl.program_id(0) * tb
    n_prime = min(_N_INFLIGHT, tb)

    def _copy(tok, t, slot):
        return pltpu.make_async_copy(
            emb_hbm.at[pl.ds(tok, 1), :],
            stage_ref.at[pl.ds(t, 1), :],
            sems.at[slot],
        )

    def _start(t):
        tok = jnp.clip(ids_smem[base + t], 0, vocab - 1)
        _copy(tok, t, t % _N_INFLIGHT).start()

    def _wait(t):
        # Wait is keyed on the semaphore / transfer size; the src row is irrelevant.
        _copy(0, t, t % _N_INFLIGHT).wait()

    # Prime the pipeline (static unrolled).
    for t in range(n_prime):
        _start(t)

    def body(t, carry):
        _wait(t)

        @pl.when(t + n_prime < tb)
        def _():
            _start(t + n_prime)

        return carry

    lax.fori_loop(0, tb, body, 0)

    # One dense scale(+cast) pass for the whole block.
    out_ref[...] = (stage_ref[...].astype(jnp.float32) * scale).astype(out_ref.dtype)


# ---------------------------------------------------------------------------
# Wrapper
# ---------------------------------------------------------------------------
def _vmem_capacity_bytes():
    try:
        return int(pltpu.get_tpu_info().vmem_capacity_bytes)
    except Exception:
        return 64 << 20   # conservative fallback (v7x per-TC VMEM)


def input_embedding(ids, emb_table, *, _force_path=None):
    """InputBedding.forward: embedding(x) * sqrt(d_model)."""
    B, S = ids.shape
    vocab_size, d_model = emb_table.shape
    scale = float(math.sqrt(d_model))

    table_dtype = emb_table.dtype
    out_dtype = table_dtype
    itemsize = jnp.dtype(table_dtype).itemsize
    table_bytes = vocab_size * d_model * itemsize

    vmem_cap = _vmem_capacity_bytes()

    n_tok = B * S
    # Token block: sublane-aligned, up to 512; shrink if output tiles would
    # dominate the VMEM budget (large d_model).
    TB = 512 if n_tok >= 512 else max(8, ((n_tok + 7) // 8) * 8)
    while TB > 64 and 2 * TB * d_model * itemsize > vmem_cap // 4:
        TB //= 2
    n_blocks = pl.cdiv(n_tok, TB)
    n_tok_p = n_blocks * TB

    ids_flat = ids.reshape(n_tok).astype(jnp.int32)
    if n_tok_p != n_tok:
        # Pad the tail block with token 0 (valid row); padded rows are trimmed.
        ids_flat = jnp.pad(ids_flat, (0, n_tok_p - n_tok))

    # --- path selection (generation-aware) --------------------------------
    # Assume the resident table may be double-buffered by the pipeliner
    # (worst case) and keep it well under the per-TensorCore VMEM capacity.
    onehot_max_vocab = 512 if itemsize >= 4 else 1024
    table_resident_bytes = 2 * table_bytes
    resident_ok = table_resident_bytes <= int(0.45 * vmem_cap)

    if _force_path is not None:
        path = _force_path
    elif vocab_size <= onehot_max_vocab and resident_ok:
        path = "onehot"
    elif resident_ok:
        path = "rowgather"
    else:
        path = "dma"

    out_block_bytes = 2 * TB * d_model * itemsize          # double-buffered out
    slack = 4 << 20
    if path == "onehot":
        ids_block_bytes = 2 * TB * 128 * 4                 # lane-padded int32 ids
        onehot_tmp = TB * vocab_size * (8 + itemsize)      # iota/cmp/one-hot temps
        needed = table_resident_bytes + out_block_bytes + ids_block_bytes + onehot_tmp + slack
    elif path == "rowgather":
        needed = table_resident_bytes + out_block_bytes + TB * d_model * 4 + slack
    else:  # dma
        needed = out_block_bytes + TB * d_model * (itemsize + 4) + slack

    cap = max(int(0.9 * vmem_cap), 32 << 20)
    vmem_limit = int(min(max(needed, 32 << 20), cap))

    compiler_params = pltpu.CompilerParams(
        dimension_semantics=("parallel",),
        vmem_limit_bytes=vmem_limit,
    )

    if path == "onehot":
        ids_2d = ids_flat.reshape(n_tok_p, 1)
        out_flat = pl.pallas_call(
            functools.partial(_embed_onehot_kernel, scale=scale),
            out_shape=jax.ShapeDtypeStruct((n_tok_p, d_model), out_dtype),
            grid=(n_blocks,),
            in_specs=[
                pl.BlockSpec((TB, 1), lambda i: (i, 0)),
                pl.BlockSpec((vocab_size, d_model), lambda i: (0, 0)),
            ],
            out_specs=pl.BlockSpec((TB, d_model), lambda i: (i, 0)),
            compiler_params=compiler_params,
        )(ids_2d, emb_table)

    elif path == "rowgather":
        # TODO(synk): chunk the scalar-prefetched ids for very large token counts
        # (1D SMEM arrays pad to the next power of two and SMEM is small).
        grid_spec = pltpu.PrefetchScalarGridSpec(
            num_scalar_prefetch=1,
            grid=(n_blocks,),
            in_specs=[
                pl.BlockSpec((vocab_size, d_model), lambda i, ids: (0, 0)),
            ],
            out_specs=pl.BlockSpec((TB, d_model), lambda i, ids: (i, 0)),
        )
        out_flat = pl.pallas_call(
            functools.partial(_embed_rowgather_kernel, scale=scale, tb=TB),
            out_shape=jax.ShapeDtypeStruct((n_tok_p, d_model), out_dtype),
            grid_spec=grid_spec,
            compiler_params=compiler_params,
        )(ids_flat, emb_table)

    else:  # "dma": HBM-streaming gather for tables too big to sit in VMEM.
        grid_spec = pltpu.PrefetchScalarGridSpec(
            num_scalar_prefetch=1,
            grid=(n_blocks,),
            in_specs=[pl.BlockSpec(memory_space=pl.ANY)],
            out_specs=pl.BlockSpec((TB, d_model), lambda i, ids: (i, 0)),
            scratch_shapes=[
                pltpu.VMEM((TB, d_model), table_dtype),
                pltpu.SemaphoreType.DMA((_N_INFLIGHT,)),
            ],
        )
        out_flat = pl.pallas_call(
            functools.partial(_embed_dma_gather_kernel, scale=scale, tb=TB,
                              vocab=vocab_size),
            out_shape=jax.ShapeDtypeStruct((n_tok_p, d_model), out_dtype),
            grid_spec=grid_spec,
            compiler_params=compiler_params,
        )(ids_flat, emb_table)

    return out_flat[:n_tok].reshape(B, S, d_model)


# ---------------------------------------------------------------------------
# Self-test
# ---------------------------------------------------------------------------
if __name__ == "__main__":
    key = jax.random.PRNGKey(0)
    k_emb, k_ids, k_emb2, k_ids2 = jax.random.split(key, 4)

    batch, seq, d_model = 2, 8, 128

    # --- Test 1: small vocab -> one-hot MXU path ---------------------------
    vocab_small = 64
    emb_small = jax.random.normal(k_emb, (vocab_small, d_model), dtype=jnp.float32)
    ids_small = jax.random.randint(k_ids, (batch, seq), 0, vocab_small, dtype=jnp.int32)

    out1 = jax.block_until_ready(input_embedding(ids_small, emb_small))
    ref1 = jnp.take(emb_small, ids_small, axis=0) * math.sqrt(d_model)
    assert out1.shape == (batch, seq, d_model)
    assert jnp.allclose(out1, ref1, atol=1e-4, rtol=1e-4), "one-hot path mismatch"

    # --- Test 2: larger vocab -> VMEM-resident unrolled row-gather path ----
    vocab_mid = 1024
    emb_mid = jax.random.normal(k_emb2, (vocab_mid, d_model), dtype=jnp.float32)
    ids_mid = jax.random.randint(k_ids2, (batch, seq), 0, vocab_mid, dtype=jnp.int32)

    out2 = jax.block_until_ready(input_embedding(ids_mid, emb_mid))
    ref2 = jnp.take(emb_mid, ids_mid, axis=0) * math.sqrt(d_model)
    assert jnp.allclose(out2, ref2, atol=1e-5, rtol=1e-5), "row-gather path mismatch"

    # --- Test 3: forced HBM-streaming DMA gather path -----------------------
    out3 = jax.block_until_ready(input_embedding(ids_small, emb_small, _force_path="dma"))
    assert jnp.allclose(out3, ref1, atol=1e-5, rtol=1e-5), "DMA-gather path mismatch"

    print("KERNEL_OK")
</pallas_src>

<mosaic_0001>
module attributes {stable_mosaic.version = 11 : i64} {
  func.func @_embed_onehot_kernel(%arg0: i32, %arg1: memref<16x1xi32, #tpu.memory_space<vmem>>, %arg2: memref<64x128xf32, #tpu.memory_space<vmem>>, %arg3: memref<16x128xf32, #tpu.memory_space<vmem>>) attributes {dimension_semantics = [#tpu.dimension_semantics<parallel>], iteration_bounds = array<i64: 1>, scalar_prefetch = 0 : i64, scratch_operands = 0 : i64, tpu.core_type = #tpu.core_type<tc>, window_params = [{transform_indices = @transform_0, window_bounds = array<i64: 16, 1>}, {pipeline_mode = #tpu.pipeline_mode<synchronous>, transform_indices = @transform_1, window_bounds = array<i64: 64, 128>}, {transform_indices = @transform_2, window_bounds = array<i64: 16, 128>}]} {
    %c0 = arith.constant 0 : index
    %c0_0 = arith.constant 0 : index
    %0 = vector.load %arg1[%c0, %c0_0] : memref<16x1xi32, #tpu.memory_space<vmem>>, vector<16x1xi32>
    %c0_i32 = arith.constant 0 : i32
    %c63_i32 = arith.constant 63 : i32
    %1 = vector.broadcast %c0_i32 : i32 to vector<16x1xi32>
    %2 = arith.maxsi %1, %0 : vector<16x1xi32>
    %3 = vector.broadcast %c63_i32 : i32 to vector<16x1xi32>
    %4 = arith.minsi %3, %2 : vector<16x1xi32>
    %5 = tpu.iota {dimensions = array<i32: 1>} : vector<16x64xi32>
    %6 = vector.broadcast %4 : vector<16x1xi32> to vector<16x64xi32>
    %7 = arith.cmpi eq, %5, %6 : vector<16x64xi32>
    %8 = arith.extui %7 : vector<16x64xi1> to vector<16x64xi32>
    %9 = arith.sitofp %8 : vector<16x64xi32> to vector<16x64xf32>
    %c0_1 = arith.constant 0 : index
    %c0_2 = arith.constant 0 : index
    %10 = vector.load %arg2[%c0_1, %c0_2] : memref<64x128xf32, #tpu.memory_space<vmem>>, vector<64x128xf32>
    %cst = arith.constant dense<0.000000e+00> : vector<16x128xf32>
    %11 = tpu.matmul %9, %10, %cst {dimension_numbers = #tpu.dot_dimension_numbers<[1], [0], [0], [1], [0, 0, 1, 1], [], []>} : vector<16x64xf32>, vector<64x128xf32>, vector<16x128xf32> -> vector<16x128xf32>
    %cst_3 = arith.constant 11.3137083 : f32
    %12 = vector.broadcast %cst_3 : f32 to vector<16x128xf32>
    %13 = arith.mulf %11, %12 : vector<16x128xf32>
    %c0_4 = arith.constant 0 : index
    %c0_5 = arith.constant 0 : index
    %14 = vector.load %arg3[%c0_4, %c0_5] : memref<16x128xf32, #tpu.memory_space<vmem>>, vector<16x128xf32>
    tpu.vector_store %arg3[%c0_4, %c0_5], %13 {strides = array<i32>} : memref<16x128xf32, #tpu.memory_space<vmem>>, vector<16x128xf32>,
    return
  }
  func.func @transform_0(%arg0: i32) -> (i32, i32) {
    %c0_i32 = arith.constant 0 : i32
    %c0_i32_0 = arith.constant 0 : i32
    return %arg0, %c0_i32 : i32, i32
  }
  func.func @transform_1(%arg0: i32) -> (i32, i32) {
    %c0_i32 = arith.constant 0 : i32
    %c0_i32_0 = arith.constant 0 : i32
    %c0_i32_1 = arith.constant 0 : i32
    return %c0_i32, %c0_i32_0 : i32, i32
  }
  func.func @transform_2(%arg0: i32) -> (i32, i32) {
    %c0_i32 = arith.constant 0 : i32
    %c0_i32_0 = arith.constant 0 : i32
    return %arg0, %c0_i32 : i32, i32
  }
}

</mosaic_0001>

<bundles_post_ra>
// kernel: tpu_custom_call.1
= control target key start
LH: loop header
LB: loop body
LE: loop exit
PB: predicated region body
PF: predicated region fallthrough
CT: control target
= control target key end

     0   :  { %7 = vsyncpa [#allocation3], 0  ;;  %s223_s0 = inlined_call_operand.vmem [shape: s32[16,1], index: 0, kind: input, shape index: {}]   ;;  %s224_s1 = inlined_call_operand.hbm [shape: f32[64,128], index: 1, kind: input, shape index: {}]   ;;  %s225_s2 = inlined_call_operand.hbm [shape: f32[16,128], index: 2, kind: output, shape index: {}]  }
   0x1   :  { %8 = vsyncpa [#allocation4], 0  ;;  %s15_s11 = sshll.u32 %s224_s1, 4  ;;  %s184_s12 = smov [#allocation2]   ;;  %s16_s11 = int_to_ptr.hbm [resolvable:$true] %s15_s11 }
   0x2   :  { %s17_s13 = sshll.u32 %s184_s12, 4  ;;  %s185_s14 = smov 128   ;;  %s18_s13 = int_to_ptr.vmem [resolvable:$true] %s17_s13 }
   0x3   :  { %s186_s15 = smov 8  }
   0x4   :  { %23 = dma.hbm_to_vmem [thread:$0]  %s16_s11, 1024, %s18_s13, [#allocation3], %s185_s14, %s185_s14, %s186_s15  }
   0x5   :  { %180 = dma.done.wait [#allocation3], 1024  }
   0x6   :  { %181 = vsyncadd [#allocation3], 4294966272  ;;  %v187_v0 = vmov 0   ;;  %v28_v1 = vld [vmem:[%s223_s0] sm:$0xff]  ;;  %v29_v2 = vld [vmem:[%s223_s0 + $0x8] sm:$0xff]  ;;  %v38_v15 = vlaneseq  ;;  %vm60_vm4 = vcmask 523264  }
   0x7   :  { %131 = vset.pattern.permute.xlu0 %v187_v0  ;;  %v59_v3 = vld [vmem:[#allocation2 + $0x38] sm:$0xff]  ;;  %vm30_vm0 = vcmp.gt.s32.totalorder %v28_v1, 0  ;;  %vm32_vm1 = vcmp.gt.s32.totalorder %v29_v2, 0  ;;  %v58_v4 = vld [vmem:[#allocation2 + $0x30] sm:$0xff]  ;;  %v57_v6 = vld [vmem:[#allocation2 + $0x28] sm:$0xff]  ;;  %v188_v18 = vmov 0.0  }
   0x8   :  { %75 = vmatpush.msra.mxu0 %v59_v3  ;;  %117 = vmatpush.msra.mxu1 %v59_v3  ;;  %v31_v5 = vsel %vm30_vm0, %v28_v1, 0  ;;  %v33_v8 = vsel %vm32_vm1, %v29_v2, 0  ;;  %v56_v9 = vld [vmem:[#allocation2 + $0x20] sm:$0xff]  ;;  %v55_v10 = vld [vmem:[#allocation2 + $0x18] sm:$0xff]  ;;  %v54_v11 = vld [vmem:[#allocation2 + $0x10] sm:$0xff]  ;;  %v39_v16 = vand.u32 127, %v38_v15 }
   0x9   :  { %vm34_vm2 = vcmp.lt.s32.totalorder %v31_v5, 63  ;;  %vm36_vm3 = vcmp.lt.s32.totalorder %v33_v8, 63  ;;  %v53_v13 = vld [vmem:[#allocation2 + $0x8] sm:$0xff]  ;;  %v52_v14 = vld [vmem:[#allocation2] sm:$0xff]  ;;  %s189_s0 = smov [#allocation5]   ;;  %s100_s22 = sshll.u32 %s225_s2, 4  ;;  %s101_s22 = int_to_ptr.hbm [resolvable:$true] %s100_s22 }
   0xa   :  { %76 = vmatpush.msra.mxu0 %v58_v4  ;;  %118 = vmatpush.msra.mxu1 %v58_v4  ;;  %v35_v7 = vsel %vm34_vm2, %v31_v5, 63  ;;  %v37_v12 = vsel %vm36_vm3, %v33_v8, 63  ;;  %s98_s19 = sshll.u32 %s189_s0, 4  ;;  %s99_s19 = int_to_ptr.vmem [resolvable:$true] %s98_s19 }
   0xb   :  { %41 = vperm.xlu0 %131, %v35_v7  }
   0xc   :  { %77 = vmatpush.msra.mxu0 %v57_v6  ;;  %119 = vmatpush.msra.mxu1 %v57_v6 }
   0xe   :  { %78 = vmatpush.msra.mxu0 %v56_v9  ;;  %120 = vmatpush.msra.mxu1 %v56_v9 }
  0x10   :  { %79 = vmatpush.msra.mxu0 %v55_v10  ;;  %121 = vmatpush.msra.mxu1 %v55_v10 }
  0x12   :  { %80 = vmatpush.msra.mxu0 %v54_v11  ;;  %122 = vmatpush.msra.mxu1 %v54_v11 }
  0x13   :  { %44 = vperm.xlu0 %131, %v37_v12  }
  0x14   :  { %81 = vmatpush.msra.mxu0 %v53_v13  ;;  %123 = vmatpush.msra.mxu1 %v53_v13 }
  0x16   :  { %82 = vmatpush.msra.mxu0 %v52_v14  ;;  %124 = vmatpush.msra.mxu1 %v52_v14 }
  0x7d   :  { %v42_v17 = vpop.permute.xlu0 %41 }
  0x7e   :  { %vm46_vm5 = vcmp.eq.s32.totalorder %v39_v16, %v42_v17 }
  0x7f   :  { %v113_v19 = vsel %vm46_vm5, 1.0, %v188_v18 }
  0x80   :  { %115 = vmatmul.msk.f32.vlgmr.msra.gmra.mxu0 %vm60_vm4, %v113_v19 }
  0x85   :  { %v45_v20 = vpop.permute.xlu0 %44 }
  0x86   :  { %vm47_vm6 = vcmp.eq.s32.totalorder %v39_v16, %v45_v20 }
  0x87   :  { %v114_v21 = vsel %vm47_vm6, 1.0, %v188_v18 }
  0x88   :  { %116 = vmatmul.msk.f32.vlgmr.msra.gmra.mxu1 %vm60_vm4, %v114_v21 }
  0xfd   :  { %v84_v22 = vpop.f32.mrf.mxu0 }
  0xfe   :  { %v90_v23 = vmul.f32 11.313708, %v84_v22 }
 0x100   :  { %92 = vst [vmem:[#allocation5] sm:$0xff] %v90_v23 }
 0x105   :  { %v87_v24 = vpop.f32.mrf.mxu1 }
 0x106   :  { %v91_v25 = vmul.f32 11.313708, %v87_v24 }
 0x108   :  { %93 = vst [vmem:[#allocation5 + $0x8] sm:$0xff] %v91_v25 }
 0x109   :  { %106 = dma.vmem_to_hbm [thread:$0]  %s99_s19, 256, %s101_s22, [#allocation4], %s185_s14, %s185_s14, %s186_s15  }
 0x10a   :  { %182 = dma.done.wait [#allocation4], 256  }
 0x10b   :  { %183 = vsyncadd [#allocation4], 4294967040 }
 0x10c   :  { %111 = vsyncpa [#allocation3], 1 }
 0x10d   :  { %112 = vsyncpa [#allocation4], 1 }

</bundles_post_ra>
